<compile_context>
chip_gen: v6e
topology: v6e:2x2x1
jax: 0.10.0
libtpu: 0.0.40
codegen_flags: <defaults>
</compile_context>

<pallas_src>
import jax
import jax.numpy as jnp
from jax.experimental import pallas as pl
from jax.experimental.pallas import tpu as pltpu


def _round_up(x, m):
    return (x + m - 1) // m * m


def _critic_kernel(x_ref, w1_ref, w2_ref, w3_ref, w4_ref, b_ref, out_ref):
    cdt = w1_ref.dtype  # MXU operand dtype (f32 or bf16); accumulation is always f32.
    # fc_1 + relu   (x = concat(state, action), built once in the wrapper)
    h = jnp.dot(x_ref[...].astype(cdt), w1_ref[...],
                preferred_element_type=jnp.float32)
    h = jnp.maximum(h + b_ref[0:1, :], 0.0)
    # fc_2 + relu
    h = jnp.dot(h.astype(cdt), w2_ref[...], preferred_element_type=jnp.float32)
    h = jnp.maximum(h + b_ref[1:2, :], 0.0)
    # fc_3 + relu
    h = jnp.dot(h.astype(cdt), w3_ref[...], preferred_element_type=jnp.float32)
    h = jnp.maximum(h + b_ref[2:3, :], 0.0)
    # fc_4 (N=1 head): VPU multiply + XLU lane reduction -- these units are idle while
    # the MXU drains layers 1-3, and an MXU matmul here would waste 127/128 columns.
    q = jnp.sum(h * w4_ref[...].astype(jnp.float32), axis=-1, keepdims=True)
    out_ref[...] = q + b_ref[3:4, 0:1]


def prepare_params(params, *, compute_dtype=jnp.float32):
    """One-time repacking of Critic weights for critic_forward.

    Hoisted out of the hot loop: per-call repacking of ~0.7 MiB of weights can cost as
    much as the kernel itself at these sizes.  compute_dtype=jnp.bfloat16 enables the
    bf16 MXU / half-DMA path (accumulation stays f32).
    """
    H = params["w2"].shape[0]
    b = jnp.zeros((4, H), jnp.float32)
    b = b.at[0, :].set(params["b1"])
    b = b.at[1, :].set(params["b2"])
    b = b.at[2, :].set(params["b3"])
    b = b.at[3, 0].set(params["b4"][0])
    return {
        "w1": params["w1"].astype(compute_dtype),        # [S+A, H]
        "w2": params["w2"].astype(compute_dtype),        # [H, H]
        "w3": params["w3"].astype(compute_dtype),        # [H, H]
        "w4_row": params["w4"].T.astype(compute_dtype),  # [1, H]
        "b": b,                                          # packed biases (f32)
    }


def critic_forward(state, action, prepped, *, batch_tile=None):
    """Pallas implementation of Critic.forward.

    state:   [B, state_dim]  float32
    action:  [B, action_dim] float32
    prepped: output of prepare_params()
    returns: q_value [B, 1] float32
    """
    B, S = state.shape
    A = action.shape[1]
    SA, H = prepped["w1"].shape
    assert SA == S + A, "prepared params do not match state/action dims"

    # fc_1 acts on concat(state, action); one [B, S+A] operand keeps fc_1 to a single
    # MXU contraction and one DMA descriptor (the concat itself is a tiny wrapper op).
    x = jnp.concatenate([state, action], axis=-1)

    # Batch tiling (see header): single grid step until the tile gets large.
    if batch_tile is not None:
        TB = max(8, _round_up(batch_tile, 8))   # sublane rule: multiple of 8
    elif B <= 4096:
        TB = _round_up(B, 8)                    # one grid step, minimal padding
    else:
        TB = 2048                               # multiple of 256 (and of 128 for v5e)
    Bp = _round_up(B, TB)
    if Bp != B:
        x = jnp.pad(x, ((0, Bp - B), (0, 0)))
    grid = (Bp // TB,)

    operands = (x, prepped["w1"], prepped["w2"], prepped["w3"],
                prepped["w4_row"], prepped["b"])

    # Explicit VMEM budget: double-buffered weights + double-buffered batch tiles,
    # with headroom; capped at v7x's 64 MiB per-TensorCore VMEM.
    w_bytes = sum(int(a.size) * a.dtype.itemsize for a in operands[1:])
    tile_bytes = TB * (S + A + 1) * 4
    vmem_limit = min(64 << 20, max(32 << 20, 2 * (w_bytes + 2 * tile_bytes) + (8 << 20)))

    flops = 2 * Bp * ((S + A) * H + 2 * H * H + H)
    bytes_accessed = Bp * (S + A) * 4 + w_bytes + Bp * 4

    out = pl.pallas_call(
        _critic_kernel,
        out_shape=jax.ShapeDtypeStruct((Bp, 1), jnp.float32),
        grid_spec=pltpu.PrefetchScalarGridSpec(
            num_scalar_prefetch=0,
            grid=grid,
            in_specs=[
                pl.BlockSpec((TB, S + A), lambda i: (i, 0)),   # batch tile
                pl.BlockSpec((S + A, H), lambda i: (0, 0)),    # W1 (VMEM-resident)
                pl.BlockSpec((H, H), lambda i: (0, 0)),        # W2 (resident)
                pl.BlockSpec((H, H), lambda i: (0, 0)),        # W3 (resident)
                pl.BlockSpec((1, H), lambda i: (0, 0)),        # W4 row
                pl.BlockSpec((4, H), lambda i: (0, 0)),        # packed biases
                # TODO(synk): for H >= 1024, add pipeline_mode=pl.Buffered(1) on the
                # constant-index weight operands so they are not double-buffered.
            ],
            out_specs=pl.BlockSpec((TB, 1), lambda i: (i, 0)),
        ),
        compiler_params=pltpu.CompilerParams(
            dimension_semantics=("parallel",),   # batch axis shards over v7x's 2 TCs
            vmem_limit_bytes=int(vmem_limit),
        ),
        cost_estimate=pl.CostEstimate(
            flops=flops, transcendentals=0, bytes_accessed=bytes_accessed),
    )(*operands)

    return out[:B]


def _linear_init(key, fan_in, fan_out):
    # mimics torch.nn.Linear default init (uniform +-1/sqrt(fan_in)); weight stored [in, out]
    kw, kb = jax.random.split(key)
    bound = 1.0 / (fan_in ** 0.5)
    w = jax.random.uniform(kw, (fan_in, fan_out), jnp.float32, -bound, bound)
    b = jax.random.uniform(kb, (fan_out,), jnp.float32, -bound, bound)
    return w, b


def init_params(key, state_dim, action_dim, hidden_size):
    k1, k2, k3, k4 = jax.random.split(key, 4)
    w1, b1 = _linear_init(k1, state_dim + action_dim, hidden_size)
    w2, b2 = _linear_init(k2, hidden_size, hidden_size)
    w3, b3 = _linear_init(k3, hidden_size, hidden_size)
    w4, b4 = _linear_init(k4, hidden_size, 1)
    return {"w1": w1, "b1": b1, "w2": w2, "b2": b2,
            "w3": w3, "b3": b3, "w4": w4, "b4": b4}


def reference_forward(state, action, params):
    x = jnp.concatenate([state, action], axis=-1)
    h = jnp.maximum(x @ params["w1"] + params["b1"], 0.0)
    h = jnp.maximum(h @ params["w2"] + params["b2"], 0.0)
    h = jnp.maximum(h @ params["w3"] + params["b3"], 0.0)
    return h @ params["w4"] + params["b4"]


if __name__ == "__main__":
    state_dim, action_dim, hidden_size = 12, 4, 256

    key = jax.random.PRNGKey(0)
    k_s, k_a, k_p = jax.random.split(key, 3)
    params = init_params(k_p, state_dim, action_dim, hidden_size)

    # One-time parameter prep (hoisted out of the hot loop).
    prepped = prepare_params(params)                                    # f32 weights
    prepped_bf16 = prepare_params(params, compute_dtype=jnp.bfloat16)   # bf16 weights

    # Small batch: single grid step, TB = 8.
    batch = 8
    state = jax.random.normal(k_s, (batch, state_dim), jnp.float32)
    action = jax.random.normal(k_a, (batch, action_dim), jnp.float32)
    q = jax.block_until_ready(critic_forward(state, action, prepped))
    ref = reference_forward(state, action, params)
    assert q.shape == (batch, 1)
    assert jnp.allclose(q, ref, atol=1e-3, rtol=1e-3)

    # Larger, non-multiple-of-128 batch: still one grid step (TB = 520), no padding.
    big_b = 520
    k_s2, k_a2 = jax.random.split(jax.random.PRNGKey(1))
    state2 = jax.random.normal(k_s2, (big_b, state_dim), jnp.float32)
    action2 = jax.random.normal(k_a2, (big_b, action_dim), jnp.float32)
    q2 = jax.block_until_ready(critic_forward(state2, action2, prepped))
    ref2 = reference_forward(state2, action2, params)
    assert q2.shape == (big_b, 1)
    assert jnp.allclose(q2, ref2, atol=1e-3, rtol=1e-3)

    # Explicit batch_tile exercises the multi-step grid + batch-padding path.
    q3 = jax.block_until_ready(critic_forward(state2, action2, prepped, batch_tile=256))
    assert jnp.allclose(q3, ref2, atol=1e-3, rtol=1e-3)

    # bf16 weight path: native MXU rate + half the weight DMA bytes, f32 accumulation.
    q4 = jax.block_until_ready(critic_forward(state2, action2, prepped_bf16))
    assert q4.shape == (big_b, 1)
    assert jnp.allclose(q4, ref2, atol=5e-2, rtol=5e-2)

    print("KERNEL_OK")
</pallas_src>

<mosaic_0001>
module attributes {stable_mosaic.version = 11 : i64} {
  func.func @_critic_kernel(%arg0: i32, %arg1: memref<8x16xf32, #tpu.memory_space<vmem>>, %arg2: memref<16x256xf32, #tpu.memory_space<vmem>>, %arg3: memref<256x256xf32, #tpu.memory_space<vmem>>, %arg4: memref<256x256xf32, #tpu.memory_space<vmem>>, %arg5: memref<1x256xf32, #tpu.memory_space<vmem>>, %arg6: memref<4x256xf32, #tpu.memory_space<vmem>>, %arg7: memref<8x1xf32, #tpu.memory_space<vmem>>) attributes {dimension_semantics = [#tpu.dimension_semantics<parallel>], iteration_bounds = array<i64: 1>, scalar_prefetch = 0 : i64, scratch_operands = 0 : i64, tpu.core_type = #tpu.core_type<tc>, window_params = [{transform_indices = @transform_0, window_bounds = array<i64: 8, 16>}, {pipeline_mode = #tpu.pipeline_mode<synchronous>, transform_indices = @transform_1, window_bounds = array<i64: 16, 256>}, {pipeline_mode = #tpu.pipeline_mode<synchronous>, transform_indices = @transform_2, window_bounds = array<i64: 256, 256>}, {pipeline_mode = #tpu.pipeline_mode<synchronous>, transform_indices = @transform_3, window_bounds = array<i64: 256, 256>}, {pipeline_mode = #tpu.pipeline_mode<synchronous>, transform_indices = @transform_4, window_bounds = array<i64: 1, 256>}, {pipeline_mode = #tpu.pipeline_mode<synchronous>, transform_indices = @transform_5, window_bounds = array<i64: 4, 256>}, {transform_indices = @transform_6, window_bounds = array<i64: 8, 1>}]} {
    %c0 = arith.constant 0 : index
    %c0_0 = arith.constant 0 : index
    %0 = vector.load %arg1[%c0, %c0_0] : memref<8x16xf32, #tpu.memory_space<vmem>>, vector<8x16xf32>
    %c0_1 = arith.constant 0 : index
    %c0_2 = arith.constant 0 : index
    %1 = vector.load %arg2[%c0_1, %c0_2] : memref<16x256xf32, #tpu.memory_space<vmem>>, vector<16x256xf32>
    %cst = arith.constant dense<0.000000e+00> : vector<8x256xf32>
    %2 = tpu.matmul %0, %1, %cst {dimension_numbers = #tpu.dot_dimension_numbers<[1], [0], [0], [1], [0, 0, 1, 1], [], []>} : vector<8x16xf32>, vector<16x256xf32>, vector<8x256xf32> -> vector<8x256xf32>
    %c0_3 = arith.constant 0 : index
    %c0_4 = arith.constant 0 : index
    %3 = vector.load %arg6[%c0_3, %c0_4] : memref<4x256xf32, #tpu.memory_space<vmem>>, vector<1x256xf32>
    %4 = vector.broadcast %3 : vector<1x256xf32> to vector<8x256xf32>
    %5 = arith.addf %2, %4 : vector<8x256xf32>
    %cst_5 = arith.constant 0.000000e+00 : f32
    %6 = vector.broadcast %cst_5 : f32 to vector<8x256xf32>
    %7 = arith.maximumf %5, %6 : vector<8x256xf32>
    %c0_6 = arith.constant 0 : index
    %c0_7 = arith.constant 0 : index
    %8 = vector.load %arg3[%c0_6, %c0_7] : memref<256x256xf32, #tpu.memory_space<vmem>>, vector<256x256xf32>
    %cst_8 = arith.constant dense<0.000000e+00> : vector<8x256xf32>
    %9 = tpu.matmul %7, %8, %cst_8 {dimension_numbers = #tpu.dot_dimension_numbers<[1], [0], [0], [1], [0, 0, 1, 1], [], []>} : vector<8x256xf32>, vector<256x256xf32>, vector<8x256xf32> -> vector<8x256xf32>
    %c1 = arith.constant 1 : index
    %c0_9 = arith.constant 0 : index
    %10 = vector.load %arg6[%c1, %c0_9] : memref<4x256xf32, #tpu.memory_space<vmem>>, vector<1x256xf32>
    %11 = vector.broadcast %10 : vector<1x256xf32> to vector<8x256xf32>
    %12 = arith.addf %9, %11 : vector<8x256xf32>
    %cst_10 = arith.constant 0.000000e+00 : f32
    %13 = vector.broadcast %cst_10 : f32 to vector<8x256xf32>
    %14 = arith.maximumf %12, %13 : vector<8x256xf32>
    %c0_11 = arith.constant 0 : index
    %c0_12 = arith.constant 0 : index
    %15 = vector.load %arg4[%c0_11, %c0_12] : memref<256x256xf32, #tpu.memory_space<vmem>>, vector<256x256xf32>
    %cst_13 = arith.constant dense<0.000000e+00> : vector<8x256xf32>
    %16 = tpu.matmul %14, %15, %cst_13 {dimension_numbers = #tpu.dot_dimension_numbers<[1], [0], [0], [1], [0, 0, 1, 1], [], []>} : vector<8x256xf32>, vector<256x256xf32>, vector<8x256xf32> -> vector<8x256xf32>
    %c2 = arith.constant 2 : index
    %c0_14 = arith.constant 0 : index
    %17 = vector.load %arg6[%c2, %c0_14] : memref<4x256xf32, #tpu.memory_space<vmem>>, vector<1x256xf32>
    %18 = vector.broadcast %17 : vector<1x256xf32> to vector<8x256xf32>
    %19 = arith.addf %16, %18 : vector<8x256xf32>
    %cst_15 = arith.constant 0.000000e+00 : f32
    %20 = vector.broadcast %cst_15 : f32 to vector<8x256xf32>
    %21 = arith.maximumf %19, %20 : vector<8x256xf32>
    %c0_16 = arith.constant 0 : index
    %c0_17 = arith.constant 0 : index
    %22 = vector.load %arg5[%c0_16, %c0_17] : memref<1x256xf32, #tpu.memory_space<vmem>>, vector<1x256xf32>
    %23 = vector.broadcast %22 : vector<1x256xf32> to vector<8x256xf32>
    %24 = arith.mulf %21, %23 : vector<8x256xf32>
    %cst_18 = arith.constant dense<0.000000e+00> : vector<8xf32>
    %25 = vector.multi_reduction <add>, %24, %cst_18 [1] : vector<8x256xf32> to vector<8xf32>
    %26 = vector.shape_cast %25 : vector<8xf32> to vector<8x1xf32>
    %c3 = arith.constant 3 : index
    %c0_19 = arith.constant 0 : index
    %27 = vector.load %arg6[%c3, %c0_19] : memref<4x256xf32, #tpu.memory_space<vmem>>, vector<1x1xf32>
    %28 = vector.broadcast %27 : vector<1x1xf32> to vector<8x1xf32>
    %29 = arith.addf %26, %28 : vector<8x1xf32>
    %c0_20 = arith.constant 0 : index
    %c0_21 = arith.constant 0 : index
    %30 = vector.load %arg7[%c0_20, %c0_21] : memref<8x1xf32, #tpu.memory_space<vmem>>, vector<8x1xf32>
    tpu.vector_store %arg7[%c0_20, %c0_21], %29 {strides = array<i32>} : memref<8x1xf32, #tpu.memory_space<vmem>>, vector<8x1xf32>,
    return
  }
  func.func @transform_0(%arg0: i32) -> (i32, i32) {
    %c0_i32 = arith.constant 0 : i32
    %c0_i32_0 = arith.constant 0 : i32
    return %arg0, %c0_i32 : i32, i32
  }
  func.func @transform_1(%arg0: i32) -> (i32, i32) {
    %c0_i32 = arith.constant 0 : i32
    %c0_i32_0 = arith.constant 0 : i32
    %c0_i32_1 = arith.constant 0 : i32
    return %c0_i32, %c0_i32_0 : i32, i32
  }
  func.func @transform_2(%arg0: i32) -> (i32, i32) {
    %c0_i32 = arith.constant 0 : i32
    %c0_i32_0 = arith.constant 0 : i32
    %c0_i32_1 = arith.constant 0 : i32
    return %c0_i32, %c0_i32_0 : i32, i32
  }
  func.func @transform_3(%arg0: i32) -> (i32, i32) {
    %c0_i32 = arith.constant 0 : i32
    %c0_i32_0 = arith.constant 0 : i32
    %c0_i32_1 = arith.constant 0 : i32
    return %c0_i32, %c0_i32_0 : i32, i32
  }
  func.func @transform_4(%arg0: i32) -> (i32, i32) {
    %c0_i32 = arith.constant 0 : i32
    %c0_i32_0 = arith.constant 0 : i32
    %c0_i32_1 = arith.constant 0 : i32
    return %c0_i32, %c0_i32_0 : i32, i32
  }
  func.func @transform_5(%arg0: i32) -> (i32, i32) {
    %c0_i32 = arith.constant 0 : i32
    %c0_i32_0 = arith.constant 0 : i32
    %c0_i32_1 = arith.constant 0 : i32
    return %c0_i32, %c0_i32_0 : i32, i32
  }
  func.func @transform_6(%arg0: i32) -> (i32, i32) {
    %c0_i32 = arith.constant 0 : i32
    %c0_i32_0 = arith.constant 0 : i32
    return %arg0, %c0_i32 : i32, i32
  }
}

</mosaic_0001>

<bundles_post_ra>
// kernel: tpu_custom_call.1
= control target key start
LH: loop header
LB: loop body
LE: loop exit
PB: predicated region body
PF: predicated region fallthrough
CT: control target
= control target key end

     0   :  { %11 = vsyncpa [#allocation3], 0  ;;  %s713_s0 = inlined_call_operand.hbm [shape: f32[8,16], index: 0, kind: input, shape index: {}]   ;;  %s714_s1 = inlined_call_operand.hbm [shape: f32[16,256], index: 1, kind: input, shape index: {}]   ;;  %s715_s2 = inlined_call_operand.hbm [shape: f32[256,256], index: 2, kind: input, shape index: {}]   ;;  %s716_s3 = inlined_call_operand.hbm [shape: f32[256,256], index: 3, kind: input, shape index: {}]   ;;  %s717_s4 = inlined_call_operand.hbm [shape: f32[1,256], index: 4, kind: input, shape index: {}]   ;;  %s718_s5 = inlined_call_operand.vmem [shape: f32[4,256], index: 5, kind: input, shape index: {}]   ;;  %s719_s6 = inlined_call_operand.vmem [shape: f32[8,1], index: 6, kind: output, shape index: {}]  }
   0x1   :  { %12 = vsyncpa [#allocation5], 0 }
   0x2   :  { %13 = vsyncpa [#allocation8], 0  ;;  %s631_s21 = smov [#allocation4]  }
   0x3   :  { %s29_s22 = sshll.u32 %s631_s21, 4  ;;  %s30_s22 = int_to_ptr.vmem [resolvable:$true] %s29_s22 }
   0x4   :  { %s533_s23 = scalar_lea.vmem %s30_s22, 512  ;;  %p538_p1 = scmp.lt.s32.totalorder %s30_s22, %s30_s22 }
   0x5   :  { %p534_p0 = scmp.ne.s32.totalorder %s30_s22, %s533_s23  ;;  %p539_p2 = scmp.lt.s32.totalorder %s533_s23, %s533_s23 }
   0x7   :  { %p540_p3 = por %p539_p2, %p538_p1 }
   0x9   :  { %p541_p4 = pnand %p540_p3, %p534_p0 }
   0xb   :  { %544 = shalt.err (!%p541_p4)
}
   0xc   :  { %s632_s24 = smov 256   ;;  %s633_s25 = smov 16  }
   0xd   :  { %35 = dma.hbm_to_vmem [thread:$0]  %s714_s1, 512, %s30_s22, [#allocation5], %s632_s24, %s632_s24, %s633_s25  }
   0xe   :  { %s634_s28 = smov [#allocation7]   ;;  %s635_s30 = smov [#allocation2]  }
   0xf   :  { %s53_s29 = sshll.u32 %s634_s28, 4  ;;  %s20_s7 = sshll.u32 %s635_s30, 4  ;;  %s54_s29 = int_to_ptr.vmem [resolvable:$true] %s53_s29  ;;  %s21_s7 = int_to_ptr.vmem [resolvable:$true] %s20_s7 }
  0x10   :  { %s553_s8 = scalar_lea.vmem %s54_s29, 8192  ;;  %p558_p6 = scmp.lt.s32.totalorder %s54_s29, %s54_s29 }
  0x11   :  { %p554_p5 = scmp.ne.s32.totalorder %s54_s29, %s553_s8  ;;  %p559_p7 = scmp.lt.s32.totalorder %s553_s8, %s553_s8 }
  0x13   :  { %p560_p8 = por %p559_p7, %p558_p6 }
  0x15   :  { %p561_p9 = pnand %p560_p8, %p554_p5 }
  0x17   :  { %564 = shalt.err (!%p561_p9)
}
  0x18   :  { %59 = dma.hbm_to_vmem [thread:$0]  %s716_s3, 8192, %s54_s29, [#allocation8], %s632_s24, %s632_s24, %s633_s25  }
  0x19   :  { %s573_s1 = scalar_lea.vmem %s21_s7, 128  ;;  %p578_p11 = scmp.lt.s32.totalorder %s21_s7, %s21_s7 }
  0x1a   :  { %p574_p10 = scmp.ne.s32.totalorder %s21_s7, %s573_s1  ;;  %p579_p12 = scmp.lt.s32.totalorder %s573_s1, %s573_s1 }
  0x1c   :  { %p580_p13 = por %p579_p12, %p578_p11 }
  0x1e   :  { %p581_p0 = pnand %p580_p13, %p574_p10 }
  0x20   :  { %584 = shalt.err (!%p581_p0)
}
  0x21   :  { %23 = dma.hbm_to_vmem [thread:$0]  %s713_s0, 128, %s21_s7, [#allocation3]  }
  0x22   :  { %s636_s13 = smov [#allocation6]   ;;  %s637_s15 = smov [#allocation9]  }
  0x23   :  { %s41_s14 = sshll.u32 %s636_s13, 4  ;;  %s66_s16 = sshll.u32 %s637_s15, 4  ;;  %s42_s14 = int_to_ptr.vmem [resolvable:$true] %s41_s14  ;;  %s67_s16 = int_to_ptr.vmem [resolvable:$true] %s66_s16 }
  0x24   :  { %s593_s17 = scalar_lea.vmem %s42_s14, 8192  ;;  %p598_p2 = scmp.lt.s32.totalorder %s42_s14, %s42_s14 }
  0x25   :  { %p594_p1 = scmp.ne.s32.totalorder %s42_s14, %s593_s17  ;;  %p599_p3 = scmp.lt.s32.totalorder %s593_s17, %s593_s17 }
  0x27   :  { %p600_p4 = por %p599_p3, %p598_p2 }
  0x29   :  { %p601_p5 = pnand %p600_p4, %p594_p1 }
  0x2b   :  { %604 = shalt.err (!%p601_p5)
}
  0x2c   :  { %47 = dma.hbm_to_vmem [thread:$0]  %s715_s2, 8192, %s42_s14, [#allocation5], %s632_s24, %s632_s24, %s633_s25  }
  0x2d   :  { %s613_s0 = scalar_lea.vmem %s67_s16, 32  ;;  %p618_p7 = scmp.lt.s32.totalorder %s67_s16, %s67_s16 }
  0x2e   :  { %p614_p6 = scmp.ne.s32.totalorder %s67_s16, %s613_s0  ;;  %p619_p8 = scmp.lt.s32.totalorder %s613_s0, %s613_s0 }
  0x30   :  { %p620_p9 = por %p619_p8, %p618_p7 }
  0x32   :  { %p621_p10 = pnand %p620_p9, %p614_p6 }
  0x34   :  { %624 = shalt.err (!%p621_p10)
}
  0x35   :  { %69 = dma.hbm_to_vmem [thread:$0]  %s717_s4, 32, %s67_s16, [#allocation8]  }
  0x36   :  { %625 = dma.done.wait [#allocation3], 128  }
  0x37   :  { %626 = vsyncadd [#allocation3], 4294967168 }
  0x38   :  { %627 = dma.done.wait [#allocation5], 8704  }
  0x39   :  { %628 = vsyncadd [#allocation5], 4294958592 }
  0x3a   :  { %629 = dma.done.wait [#allocation8], 8224  }
  0x3b   :  { %630 = vsyncadd [#allocation8], 4294959072  ;;  %v638_v0 = vmov 0.0   ;;  %v91_v1 = vld [vmem:[#allocation4 + $0x18] sm:$0xff]  ;;  %v90_v2 = vld [vmem:[#allocation4 + $0x10] sm:$0xff]  ;;  %vm104_vm0 = vcmask 130048  }
  0x3c   :  { %172 = vmatprep.mubr.f32.mxu0 %v638_v0  ;;  %v89_v3 = vld [vmem:[#allocation4 + $0x8] sm:$0xff]  ;;  %136 = vmatprep.subr.mxu0 %v91_v1  ;;  %v88_v4 = vld [vmem:[#allocation4] sm:$0xff]  ;;  %v87_v5 = vld [vmem:[#allocation2] sm:$0xff]  ;;  %vm504_vm1 = vcmask 7168  }
  0x3d   :  { %v212_v6 = vld [vmem:[#allocation6 + $0xf8] sm:$0xff]  ;;  %137 = vmatpush1.msra.mxu0 %v90_v2  ;;  %v211_v7 = vld [vmem:[#allocation6 + $0xf0] sm:$0xff]  ;;  %v210_v8 = vld [vmem:[#allocation6 + $0xe8] sm:$0xff] }
  0x3e   :  { %258 = vmatprep.subr.mxu1 %v212_v6  ;;  %v209_v9 = vld [vmem:[#allocation6 + $0xe0] sm:$0xff]  ;;  %138 = vmatprep.subr.mxu0 %v89_v3  ;;  %v208_v10 = vld [vmem:[#allocation6 + $0xd8] sm:$0xff]  ;;  %v207_v11 = vld [vmem:[#allocation6 + $0xd0] sm:$0xff] }
  0x3f   :  { %259 = vmatpush1.msra.mxu1 %v211_v7  ;;  %139 = vmatpush1.msra.mxu0 %v88_v4  ;;  %v206_v12 = vld [vmem:[#allocation6 + $0xc8] sm:$0xff]  ;;  %v205_v13 = vld [vmem:[#allocation6 + $0xc0] sm:$0xff]  ;;  %v204_v14 = vld [vmem:[#allocation6 + $0xb8] sm:$0xff] }
  0x40   :  { %260 = vmatprep.subr.mxu1 %v210_v8  ;;  %513 = vmatmul.mubr.msk.f32.vlgmr.msra.gmra.mxu0 %vm104_vm0, %v87_v5  ;;  %v203_v15 = vld [vmem:[#allocation6 + $0xb0] sm:$0xff]  ;;  %v202_v16 = vld [vmem:[#allocation6 + $0xa8] sm:$0xff]  ;;  %v201_v17 = vld [vmem:[#allocation6 + $0xa0] sm:$0xff] }
  0x41   :  { %261 = vmatpush1.msra.mxu1 %v209_v9  ;;  %v200_v18 = vld [vmem:[#allocation6 + $0x98] sm:$0xff]  ;;  %v199_v19 = vld [vmem:[#allocation6 + $0x90] sm:$0xff]  ;;  %v198_v20 = vld [vmem:[#allocation6 + $0x88] sm:$0xff] }
  0x42   :  { %262 = vmatprep.subr.mxu1 %v208_v10  ;;  %v197_v21 = vld [vmem:[#allocation6 + $0x80] sm:$0xff]  ;;  %v196_v22 = vld [vmem:[#allocation6 + $0x78] sm:$0xff]  ;;  %v195_v23 = vld [vmem:[#allocation6 + $0x70] sm:$0xff] }
  0x43   :  { %263 = vmatpush1.msra.mxu1 %v207_v11  ;;  %v194_v24 = vld [vmem:[#allocation6 + $0x68] sm:$0xff]  ;;  %v193_v25 = vld [vmem:[#allocation6 + $0x60] sm:$0xff]  ;;  %v192_v26 = vld [vmem:[#allocation6 + $0x58] sm:$0xff] }
  0x44   :  { %264 = vmatprep.subr.mxu1 %v206_v12  ;;  %v191_v27 = vld [vmem:[#allocation6 + $0x50] sm:$0xff]  ;;  %v190_v28 = vld [vmem:[#allocation6 + $0x48] sm:$0xff]  ;;  %v189_v29 = vld [vmem:[#allocation6 + $0x40] sm:$0xff] }
  0x45   :  { %265 = vmatpush1.msra.mxu1 %v205_v13  ;;  %v188_v30 = vld [vmem:[#allocation6 + $0x38] sm:$0xff]  ;;  %v187_v31 = vld [vmem:[#allocation6 + $0x30] sm:$0xff]  ;;  %v186_v32 = vld [vmem:[#allocation6 + $0x28] sm:$0xff] }
  0x46   :  { %266 = vmatprep.subr.mxu1 %v204_v14  ;;  %v185_v33 = vld [vmem:[#allocation6 + $0x20] sm:$0xff]  ;;  %v184_v34 = vld [vmem:[#allocation6 + $0x18] sm:$0xff]  ;;  %v183_v35 = vld [vmem:[#allocation6 + $0x10] sm:$0xff] }
  0x47   :  { %267 = vmatpush1.msra.mxu1 %v203_v15  ;;  %v182_v36 = vld [vmem:[#allocation6 + $0x8] sm:$0xff]  ;;  %v181_v37 = vld [vmem:[#allocation6] sm:$0xff]  ;;  %v244_v38 = vld [vmem:[#allocation6 + $0x1f8] sm:$0xff] }
  0x48   :  { %268 = vmatprep.subr.mxu1 %v202_v16  ;;  %v243_v39 = vld [vmem:[#allocation6 + $0x1f0] sm:$0xff]  ;;  %v242_v40 = vld [vmem:[#allocation6 + $0x1e8] sm:$0xff]  ;;  %v241_v41 = vld [vmem:[#allocation6 + $0x1e0] sm:$0xff] }
  0x49   :  { %269 = vmatpush1.msra.mxu1 %v201_v17  ;;  %v240_v42 = vld [vmem:[#allocation6 + $0x1d8] sm:$0xff]  ;;  %v239_v43 = vld [vmem:[#allocation6 + $0x1d0] sm:$0xff]  ;;  %v238_v44 = vld [vmem:[#allocation6 + $0x1c8] sm:$0xff] }
  0x4a   :  { %270 = vmatprep.subr.mxu1 %v200_v18  ;;  %v237_v45 = vld [vmem:[#allocation6 + $0x1c0] sm:$0xff]  ;;  %v236_v46 = vld [vmem:[#allocation6 + $0x1b8] sm:$0xff]  ;;  %v235_v47 = vld [vmem:[#allocation6 + $0x1b0] sm:$0xff] }
  0x4b   :  { %271 = vmatpush1.msra.mxu1 %v199_v19  ;;  %v234_v48 = vld [vmem:[#allocation6 + $0x1a8] sm:$0xff]  ;;  %v233_v49 = vld [vmem:[#allocation6 + $0x1a0] sm:$0xff]  ;;  %v232_v50 = vld [vmem:[#allocation6 + $0x198] sm:$0xff] }
  0x4c   :  { %272 = vmatprep.subr.mxu1 %v198_v20  ;;  %v231_v51 = vld [vmem:[#allocation6 + $0x190] sm:$0xff]  ;;  %v230_v52 = vld [vmem:[#allocation6 + $0x188] sm:$0xff]  ;;  %v229_v53 = vld [vmem:[#allocation6 + $0x180] sm:$0xff] }
  0x4d   :  { %273 = vmatpush1.msra.mxu1 %v197_v21  ;;  %v228_v54 = vld [vmem:[#allocation6 + $0x178] sm:$0xff]  ;;  %v227_v55 = vld [vmem:[#allocation6 + $0x170] sm:$0xff]  ;;  %v226_v56 = vld [vmem:[#allocation6 + $0x168] sm:$0xff] }
  0x4e   :  { %274 = vmatprep.subr.mxu1 %v196_v22  ;;  %v225_v57 = vld [vmem:[#allocation6 + $0x160] sm:$0xff]  ;;  %v224_v58 = vld [vmem:[#allocation6 + $0x158] sm:$0xff]  ;;  %v223_v59 = vld [vmem:[#allocation6 + $0x150] sm:$0xff] }
  0x4f   :  { %275 = vmatpush1.msra.mxu1 %v195_v23  ;;  %v222_v60 = vld [vmem:[#allocation6 + $0x148] sm:$0xff]  ;;  %v221_v61 = vld [vmem:[#allocation6 + $0x140] sm:$0xff]  ;;  %v220_v62 = vld [vmem:[#allocation6 + $0x138] sm:$0xff] }
  0x50   :  { %276 = vmatprep.subr.mxu1 %v194_v24  ;;  %v219_v63 = vld [vmem:[#allocation6 + $0x130] sm:$0xff]  ;;  %v218_v0 = vld [vmem:[#allocation6 + $0x128] sm:$0xff]  ;;  %v217_v1 = vld [vmem:[#allocation6 + $0x120] sm:$0xff] }
  0x51   :  { %277 = vmatpush1.msra.mxu1 %v193_v25  ;;  %v216_v2 = vld [vmem:[#allocation6 + $0x118] sm:$0xff]  ;;  %v215_v3 = vld [vmem:[#allocation6 + $0x110] sm:$0xff]  ;;  %v214_v4 = vld [vmem:[#allocation6 + $0x108] sm:$0xff] }
  0x52   :  { %278 = vmatprep.subr.mxu1 %v192_v26  ;;  %v213_v5 = vld [vmem:[#allocation6 + $0x100] sm:$0xff]  ;;  %v362_v6 = vld [vmem:[#allocation7 + $0xf8] sm:$0xff]  ;;  %v361_v7 = vld [vmem:[#allocation7 + $0xf0] sm:$0xff] }
  0x53   :  { %279 = vmatpush1.msra.mxu1 %v191_v27  ;;  %v360_v8 = vld [vmem:[#allocation7 + $0xe8] sm:$0xff]  ;;  %408 = vmatprep.subr.mxu0 %v362_v6  ;;  %v359_v9 = vld [vmem:[#allocation7 + $0xe0] sm:$0xff]  ;;  %v358_v10 = vld [vmem:[#allocation7 + $0xd8] sm:$0xff] }
  0x54   :  { %280 = vmatprep.subr.mxu1 %v190_v28  ;;  %409 = vmatpush1.msra.mxu0 %v361_v7  ;;  %v357_v11 = vld [vmem:[#allocation7 + $0xd0] sm:$0xff]  ;;  %v356_v12 = vld [vmem:[#allocation7 + $0xc8] sm:$0xff]  ;;  %v355_v13 = vld [vmem:[#allocation7 + $0xc0] sm:$0xff] }
  0x55   :  { %281 = vmatpush1.msra.mxu1 %v189_v29  ;;  %410 = vmatprep.subr.mxu0 %v360_v8  ;;  %v354_v14 = vld [vmem:[#allocation7 + $0xb8] sm:$0xff]  ;;  %v353_v15 = vld [vmem:[#allocation7 + $0xb0] sm:$0xff]  ;;  %v352_v16 = vld [vmem:[#allocation7 + $0xa8] sm:$0xff] }
  0x56   :  { %282 = vmatprep.subr.mxu1 %v188_v30  ;;  %411 = vmatpush1.msra.mxu0 %v359_v9  ;;  %v351_v17 = vld [vmem:[#allocation7 + $0xa0] sm:$0xff]  ;;  %v350_v18 = vld [vmem:[#allocation7 + $0x98] sm:$0xff]  ;;  %v349_v19 = vld [vmem:[#allocation7 + $0x90] sm:$0xff] }
  0x57   :  { %283 = vmatpush1.msra.mxu1 %v187_v31  ;;  %412 = vmatprep.subr.mxu0 %v358_v10  ;;  %v348_v20 = vld [vmem:[#allocation7 + $0x88] sm:$0xff]  ;;  %v347_v21 = vld [vmem:[#allocation7 + $0x80] sm:$0xff]  ;;  %v346_v22 = vld [vmem:[#allocation7 + $0x78] sm:$0xff] }
  0x58   :  { %284 = vmatprep.subr.mxu1 %v186_v32  ;;  %413 = vmatpush1.msra.mxu0 %v357_v11  ;;  %v345_v23 = vld [vmem:[#allocation7 + $0x70] sm:$0xff]  ;;  %v344_v24 = vld [vmem:[#allocation7 + $0x68] sm:$0xff]  ;;  %v343_v25 = vld [vmem:[#allocation7 + $0x60] sm:$0xff] }
  0x59   :  { %285 = vmatpush1.msra.mxu1 %v185_v33  ;;  %414 = vmatprep.subr.mxu0 %v356_v12  ;;  %v342_v26 = vld [vmem:[#allocation7 + $0x58] sm:$0xff]  ;;  %v341_v27 = vld [vmem:[#allocation7 + $0x50] sm:$0xff]  ;;  %v340_v28 = vld [vmem:[#allocation7 + $0x48] sm:$0xff] }
  0x5a   :  { %286 = vmatprep.subr.mxu1 %v184_v34  ;;  %415 = vmatpush1.msra.mxu0 %v355_v13  ;;  %v339_v29 = vld [vmem:[#allocation7 + $0x40] sm:$0xff]  ;;  %v338_v30 = vld [vmem:[#allocation7 + $0x38] sm:$0xff]  ;;  %v337_v31 = vld [vmem:[#allocation7 + $0x30] sm:$0xff] }
  0x5b   :  { %287 = vmatpush1.msra.mxu1 %v183_v35  ;;  %416 = vmatprep.subr.mxu0 %v354_v14  ;;  %v336_v32 = vld [vmem:[#allocation7 + $0x28] sm:$0xff]  ;;  %v335_v33 = vld [vmem:[#allocation7 + $0x20] sm:$0xff]  ;;  %v334_v34 = vld [vmem:[#allocation7 + $0x18] sm:$0xff] }
  0x5c   :  { %288 = vmatprep.subr.mxu1 %v182_v36  ;;  %417 = vmatpush1.msra.mxu0 %v353_v15  ;;  %v333_v35 = vld [vmem:[#allocation7 + $0x10] sm:$0xff]  ;;  %v332_v36 = vld [vmem:[#allocation7 + $0x8] sm:$0xff]  ;;  %v370_v11 = vld [vmem:[#allocation7 + $0x138] sm:$0xff] }
  0x5d   :  { %289 = vmatpush1.msra.mxu1 %v181_v37  ;;  %418 = vmatprep.subr.mxu0 %v352_v16  ;;  %v331_v37 = vld [vmem:[#allocation7] sm:$0xff]  ;;  %v369_v12 = vld [vmem:[#allocation7 + $0x130] sm:$0xff]  ;;  %v368_v13 = vld [vmem:[#allocation7 + $0x128] sm:$0xff] }
  0x5e   :  { %290 = vmatprep.subr.mxu1 %v244_v38  ;;  %419 = vmatpush1.msra.mxu0 %v351_v17  ;;  %v394_v38 = vld [vmem:[#allocation7 + $0x1f8] sm:$0xff]  ;;  %v367_v14 = vld [vmem:[#allocation7 + $0x120] sm:$0xff]  ;;  %v365_v16 = vld [vmem:[#allocation7 + $0x110] sm:$0xff] }
  0x5f   :  { %291 = vmatpush2.msra.mxu1 %v243_v39  ;;  %420 = vmatprep.subr.mxu0 %v350_v18  ;;  %v393_v39 = vld [vmem:[#allocation7 + $0x1f0] sm:$0xff]  ;;  %v366_v15 = vld [vmem:[#allocation7 + $0x118] sm:$0xff]  ;;  %v364_v17 = vld [vmem:[#allocation7 + $0x108] sm:$0xff] }
  0x60   :  { %292 = vmatprep.subr.mxu1 %v242_v40  ;;  %421 = vmatpush1.msra.mxu0 %v349_v19  ;;  %v392_v40 = vld [vmem:[#allocation7 + $0x1e8] sm:$0xff]  ;;  %v363_v18 = vld [vmem:[#allocation7 + $0x100] sm:$0xff]  ;;  %v514_v19 = vld [vmem:[%s718_s5 + $0x1] ss:$4 sm:$0x3] }
  0x61   :  { %293 = vmatpush2.msra.mxu1 %v241_v41  ;;  %422 = vmatprep.subr.mxu0 %v348_v20  ;;  %v391_v41 = vld [vmem:[#allocation7 + $0x1e0] sm:$0xff] }
  0x62   :  { %294 = vmatprep.subr.mxu1 %v240_v42  ;;  %423 = vmatpush1.msra.mxu0 %v347_v21  ;;  %v390_v42 = vld [vmem:[#allocation7 + $0x1d8] sm:$0xff] }
  0x63   :  { %295 = vmatpush2.msra.mxu1 %v239_v43  ;;  %424 = vmatprep.subr.mxu0 %v346_v22  ;;  %v389_v43 = vld [vmem:[#allocation7 + $0x1d0] sm:$0xff] }
  0x64   :  { %296 = vmatprep.subr.mxu1 %v238_v44  ;;  %425 = vmatpush1.msra.mxu0 %v345_v23  ;;  %v388_v44 = vld [vmem:[#allocation7 + $0x1c8] sm:$0xff] }
  0x65   :  { %297 = vmatpush2.msra.mxu1 %v237_v45  ;;  %426 = vmatprep.subr.mxu0 %v344_v24  ;;  %v387_v45 = vld [vmem:[#allocation7 + $0x1c0] sm:$0xff] }
  0x66   :  { %298 = vmatprep.subr.mxu1 %v236_v46  ;;  %427 = vmatpush1.msra.mxu0 %v343_v25  ;;  %v386_v46 = vld [vmem:[#allocation7 + $0x1b8] sm:$0xff] }
  0x67   :  { %299 = vmatpush2.msra.mxu1 %v235_v47  ;;  %428 = vmatprep.subr.mxu0 %v342_v26  ;;  %v385_v47 = vld [vmem:[#allocation7 + $0x1b0] sm:$0xff] }
  0x68   :  { %300 = vmatprep.subr.mxu1 %v234_v48  ;;  %429 = vmatpush1.msra.mxu0 %v341_v27  ;;  %v384_v48 = vld [vmem:[#allocation7 + $0x1a8] sm:$0xff] }
  0x69   :  { %301 = vmatpush2.msra.mxu1 %v233_v49  ;;  %430 = vmatprep.subr.mxu0 %v340_v28  ;;  %v383_v49 = vld [vmem:[#allocation7 + $0x1a0] sm:$0xff]  ;;  %v515_v28 = vld [vmem:[%s718_s5 + $0x2] ss:$4 sm:$0x3] }
  0x6a   :  { %302 = vmatprep.subr.mxu1 %v232_v50  ;;  %431 = vmatpush1.msra.mxu0 %v339_v29  ;;  %v382_v50 = vld [vmem:[#allocation7 + $0x198] sm:$0xff] }
  0x6b   :  { %303 = vmatpush2.msra.mxu1 %v231_v51  ;;  %432 = vmatprep.subr.mxu0 %v338_v30  ;;  %v381_v51 = vld [vmem:[#allocation7 + $0x190] sm:$0xff] }
  0x6c   :  { %304 = vmatprep.subr.mxu1 %v230_v52  ;;  %433 = vmatpush1.msra.mxu0 %v337_v31  ;;  %v380_v52 = vld [vmem:[#allocation7 + $0x188] sm:$0xff] }
  0x6d   :  { %305 = vmatpush2.msra.mxu1 %v229_v53  ;;  %434 = vmatprep.subr.mxu0 %v336_v32  ;;  %v379_v53 = vld [vmem:[#allocation7 + $0x180] sm:$0xff] }
  0x6e   :  { %306 = vmatprep.subr.mxu1 %v228_v54  ;;  %435 = vmatpush1.msra.mxu0 %v335_v33  ;;  %v378_v54 = vld [vmem:[#allocation7 + $0x178] sm:$0xff]  ;;  %v481_v32 = vld [vmem:[#allocation9] sm:$0x3] }
  0x6f   :  { %307 = vmatpush2.msra.mxu1 %v227_v55  ;;  %436 = vmatprep.subr.mxu0 %v334_v34  ;;  %v377_v55 = vld [vmem:[#allocation7 + $0x170] sm:$0xff] }
  0x70   :  { %308 = vmatprep.subr.mxu1 %v226_v56  ;;  %437 = vmatpush1.msra.mxu0 %v333_v35  ;;  %v376_v56 = vld [vmem:[#allocation7 + $0x168] sm:$0xff] }
  0x71   :  { %309 = vmatpush2.msra.mxu1 %v225_v57  ;;  %438 = vmatprep.subr.mxu0 %v332_v36  ;;  %v375_v57 = vld [vmem:[#allocation7 + $0x160] sm:$0xff] }
  0x72   :  { %310 = vmatprep.subr.mxu1 %v224_v58  ;;  %439 = vmatpush1.msra.mxu0 %v331_v37  ;;  %v374_v58 = vld [vmem:[#allocation7 + $0x158] sm:$0xff] }
  0x73   :  { %311 = vmatpush2.msra.mxu1 %v223_v59  ;;  %440 = vmatprep.subr.mxu0 %v394_v38  ;;  %v373_v59 = vld [vmem:[#allocation7 + $0x150] sm:$0xff] }
  0x74   :  { %312 = vmatprep.subr.mxu1 %v222_v60  ;;  %441 = vmatpush2.msra.mxu0 %v393_v39  ;;  %v372_v60 = vld [vmem:[#allocation7 + $0x148] sm:$0xff] }
  0x75   :  { %313 = vmatpush2.msra.mxu1 %v221_v61  ;;  %442 = vmatprep.subr.mxu0 %v392_v40  ;;  %v371_v61 = vld [vmem:[#allocation7 + $0x140] sm:$0xff] }
  0x76   :  { %314 = vmatprep.subr.mxu1 %v220_v62  ;;  %443 = vmatpush2.msra.mxu0 %v391_v41  ;;  %v94_v62 = vlaneseq }
  0x77   :  { %315 = vmatpush2.msra.mxu1 %v219_v63  ;;  %444 = vmatprep.subr.mxu0 %v390_v42 }
  0x78   :  { %316 = vmatprep.subr.mxu1 %v218_v0  ;;  %445 = vmatpush2.msra.mxu0 %v389_v43  ;;  %v95_v63 = vshrl.u32 %v94_v62, 7  ;;  %v516_v43 = vld [vmem:[%s718_s5 + $0x3] ss:$0 sm:$0xff] }
  0x79   :  { %317 = vmatpush2.msra.mxu1 %v217_v1  ;;  %446 = vmatprep.subr.mxu0 %v388_v44  ;;  %v92_v1 = vld [vmem:[%s718_s5] ss:$4 sm:$0x3] }
  0x7a   :  { %318 = vmatprep.subr.mxu1 %v216_v2  ;;  %447 = vmatpush2.msra.mxu0 %v387_v45  ;;  %v96_v0 = vsub.s32 0, %v95_v63  ;;  %v100_v2 = vsub.s32 1, %v95_v63 }
  0x7b   :  { %319 = vmatpush2.msra.mxu1 %v215_v3  ;;  %448 = vmatprep.subr.mxu0 %v386_v46 }
  0x7c   :  { %320 = vmatprep.subr.mxu1 %v214_v4  ;;  %449 = vmatpush2.msra.mxu0 %v385_v47  ;;  %v97_v3 = vrot.slane %v92_v1, %v96_v0  ;;  %v101_v4 = vrot.slane %v92_v1, %v100_v2  ;;  %v251_v20 = vrot.slane %v514_v19, %v96_v0 }
  0x7d   :  { %321 = vmatpush2.msra.mxu1 %v213_v5  ;;  %450 = vmatprep.subr.mxu0 %v384_v48  ;;  %v255_v21 = vrot.slane %v514_v19, %v100_v2  ;;  %v401_v29 = vrot.slane %v515_v28, %v96_v0  ;;  %v405_v30 = vrot.slane %v515_v28, %v100_v2 }
  0x7e   :  { %451 = vmatpush2.msra.mxu0 %v383_v49  ;;  %v486_v37 = vrot.slane %v481_v32, %v96_v0  ;;  %v490_v38 = vrot.slane %v481_v32, %v100_v2 }
  0x7f   :  { %452 = vmatprep.subr.mxu0 %v382_v50 }
  0x80   :  { %453 = vmatpush2.msra.mxu0 %v381_v51 }
  0x81   :  { %454 = vmatprep.subr.mxu0 %v380_v52 }
  0x82   :  { %455 = vmatpush2.msra.mxu0 %v379_v53 }
  0x83   :  { %456 = vmatprep.subr.mxu0 %v378_v54 }
  0x84   :  { %457 = vmatpush2.msra.mxu0 %v377_v55 }
  0x85   :  { %458 = vmatprep.subr.mxu0 %v376_v56 }
  0x86   :  { %459 = vmatpush2.msra.mxu0 %v375_v57 }
  0x87   :  { %460 = vmatprep.subr.mxu0 %v374_v58 }
  0x88   :  { %461 = vmatpush2.msra.mxu0 %v373_v59 }
  0x89   :  { %462 = vmatprep.subr.mxu0 %v372_v60 }
  0x8a   :  { %463 = vmatpush2.msra.mxu0 %v371_v61 }
  0x8b   :  { %464 = vmatprep.subr.mxu0 %v370_v11 }
  0x8c   :  { %465 = vmatpush2.msra.mxu0 %v369_v12 }
  0x8d   :  { %466 = vmatprep.subr.mxu0 %v368_v13 }
  0x8e   :  { %467 = vmatpush2.msra.mxu0 %v367_v14 }
  0x8f   :  { %468 = vmatprep.subr.mxu0 %v366_v15 }
  0x90   :  { %469 = vmatpush2.msra.mxu0 %v365_v16 }
  0x91   :  { %470 = vmatprep.subr.mxu0 %v364_v17 }
  0x92   :  { %471 = vmatpush2.msra.mxu0 %v363_v18 }
 0x100   :  { %v174_v5 = vpop.f32.mrf.mxu0 }
 0x101   :  { %v175_v6 = vadd.f32 %v174_v5, %v97_v3 }
 0x102   :  { %v176_v7 = vpop.f32.mrf.mxu0 }
 0x103   :  { %v177_v8 = vadd.f32 %v176_v7, %v101_v4  ;;  %v179_v10 = vmax.f32 %v175_v6, 0.0 }
 0x105   :  { %v180_v9 = vmax.f32 %v177_v8, 0.0 }
 0x107   :  { %322 = vmatprep.mubr.f32.mxu1 %v180_v9 }
 0x108   :  { %323 = vmatmul.mubr.f32.vlgmr.msra.gmra.mxu1 %v179_v10 }
 0x1c8   :  { %v324_v22 = vpop.f32.mrf.mxu1 }
 0x1c9   :  { %v325_v23 = vadd.f32 %v324_v22, %v251_v20 }
 0x1ca   :  { %v326_v24 = vpop.f32.mrf.mxu1 }
 0x1cb   :  { %v327_v25 = vadd.f32 %v326_v24, %v255_v21  ;;  %v329_v27 = vmax.f32 %v325_v23, 0.0 }
 0x1cd   :  { %v330_v26 = vmax.f32 %v327_v25, 0.0 }
 0x1cf   :  { %472 = vmatprep.mubr.f32.mxu0 %v330_v26 }
 0x1d0   :  { %473 = vmatmul.mubr.f32.vlgmr.msra.gmra.mxu0 %v329_v27 }
 0x290   :  { %v474_v31 = vpop.f32.mrf.mxu0 }
 0x291   :  { %v475_v33 = vadd.f32 %v474_v31, %v401_v29 }
 0x292   :  { %v476_v34 = vpop.f32.mrf.mxu0 }
 0x293   :  { %v479_v35 = vmax.f32 %v475_v33, 0.0  ;;  %v477_v36 = vadd.f32 %v476_v34, %v405_v30 }
 0x295   :  { %v480_v39 = vmax.f32 %v477_v36, 0.0  ;;  %v493_v40 = vmul.f32 %v486_v37, %v479_v35 }
 0x297   :  { %v494_v41 = vmul.f32 %v490_v38, %v480_v39 }
 0x299   :  { %v495_v42 = vadd.f32 %v494_v41, %v493_v40 }
 0x29b   :  { %496 = vadd.xlane.f32.xlu0 %v495_v42 }
 0x324   :  { %v497_v44 = vpop.xlane.xlu0 %496 }
 0x325   :  { %v503_v45 = vadd.f32 %v516_v43, %v497_v44 }
 0x327   :  { %505 = vst.msk [vmem:[%s719_s6] sm:$0xff] %vm504_vm1, %v503_v45 }
 0x328   :  { %510 = vsyncpa [#allocation3], 1 }
 0x329   :  { %511 = vsyncpa [#allocation5], 1 }
 0x32a   :  { %512 = vsyncpa [#allocation8], 1 }

</bundles_post_ra>
